<compile_context>
chip_gen: v5e
topology: v5e:2x2
jax: 0.10.0
libtpu: 0.0.40
codegen_flags: <defaults>
</compile_context>

<pallas_src>
import jax
import jax.numpy as jnp
from jax.experimental import pallas as pl
from jax.experimental.pallas import tpu as pltpu

# Fits v7x's 64 MiB physical VMEM with headroom; v5e/v6e have 128 MiB.
_VMEM_LIMIT = 48 * 1024 * 1024


def _pick_hw_tile(hw, max_tile=2048):
    """Largest lane tile (multiple of 128 when possible) that divides hw."""
    if hw <= max_tile:
        return hw
    for t in range(max_tile, 127, -128):
        if hw % t == 0:
            return t
    return hw  # fallback: single block


# ---------------------------------------------------------------------------
# Pallas kernel 1: pointwise (1x1) conv  y = W @ x  on lane-dense [Cin, hw_tile]
# slabs (used for initial_mapping when in_channels != out_channels).
# ---------------------------------------------------------------------------
def _pw_conv_kernel(x_ref, w_ref, o_ref):
    o_ref[...] = jnp.dot(w_ref[...], x_ref[...],
                         preferred_element_type=jnp.float32).astype(o_ref.dtype)


def pointwise_conv(x_nchw, w, max_hw_tile=2048):
    """x_nchw: [B, Cin, H, W]; w: [Cout, Cin] -> [B, Cout, H, W]."""
    B, Cin, H, W = x_nchw.shape
    Cout = w.shape[0]
    HW = H * W
    t = _pick_hw_tile(HW, max_hw_tile)
    x = x_nchw.reshape(B, Cin, HW)
    out = pl.pallas_call(
        _pw_conv_kernel,
        out_shape=jax.ShapeDtypeStruct((B, Cout, HW), x_nchw.dtype),
        grid=(B, HW // t),
        in_specs=[
            pl.BlockSpec((None, Cin, t), lambda b, j: (b, 0, j)),
            pl.BlockSpec((Cout, Cin), lambda b, j: (0, 0)),
        ],
        out_specs=pl.BlockSpec((None, Cout, t), lambda b, j: (b, 0, j)),
        compiler_params=pltpu.CompilerParams(
            dimension_semantics=("parallel", "parallel"),
            vmem_limit_bytes=_VMEM_LIMIT),
    )(x, w)
    return out.reshape(B, Cout, H, W)


# ---------------------------------------------------------------------------
# Pallas kernel 2: fused kernel branch
#   kern = W_span @ relu( bn_scale * (W_reduce @ x_pool) + bn_shift )
# The reduced activation stays in registers/VMEM (no HBM round trip between the
# two 1x1 convs).  Lane-dense hw tiles, grid (B, hw_tiles).
# ---------------------------------------------------------------------------
def _kernel_branch_kernel(x_ref, wr_ref, scale_ref, shift_ref, ws_ref, o_ref):
    red = jnp.dot(wr_ref[...], x_ref[...], preferred_element_type=jnp.float32)
    red = jnp.maximum(red * scale_ref[...] + shift_ref[...], 0.0)
    o_ref[...] = jnp.dot(ws_ref[...], red,
                         preferred_element_type=jnp.float32).astype(o_ref.dtype)


def kernel_branch(x_pool, w_reduce, bn_scale, bn_shift, w_span, max_hw_tile=2048):
    """x_pool: [B, Cin, Hp, Wp] -> kern: [B, K*K*G, Hp, Wp]."""
    B, Cin, Hp, Wp = x_pool.shape
    Cred = w_reduce.shape[0]
    KKG = w_span.shape[0]
    HW = Hp * Wp
    t = _pick_hw_tile(HW, max_hw_tile)
    x = x_pool.reshape(B, Cin, HW)
    out = pl.pallas_call(
        _kernel_branch_kernel,
        out_shape=jax.ShapeDtypeStruct((B, KKG, HW), x_pool.dtype),
        grid=(B, HW // t),
        in_specs=[
            pl.BlockSpec((None, Cin, t), lambda b, j: (b, 0, j)),
            pl.BlockSpec((Cred, Cin), lambda b, j: (0, 0)),
            pl.BlockSpec((Cred, 1), lambda b, j: (0, 0)),
            pl.BlockSpec((Cred, 1), lambda b, j: (0, 0)),
            pl.BlockSpec((KKG, Cred), lambda b, j: (0, 0)),
        ],
        out_specs=pl.BlockSpec((None, KKG, t), lambda b, j: (b, 0, j)),
        compiler_params=pltpu.CompilerParams(
            dimension_semantics=("parallel", "parallel"),
            vmem_limit_bytes=_VMEM_LIMIT),
    )(x, w_reduce, bn_scale.reshape(Cred, 1), bn_shift.reshape(Cred, 1), w_span)
    return out.reshape(B, KKG, Hp, Wp)


# ---------------------------------------------------------------------------
# Pallas kernel 3 (fast path): involution aggregation, stride=1, "same" spatial.
# Lane-dense [Cg, H*W] slabs; each unfold tap is an XLU roll of the flattened
# input plus a boundary mask folded into the per-tap kernel weights — no
# jnp.pad HBM copy and no unaligned strided VMEM slices.
# ---------------------------------------------------------------------------
def make_involution_roll_kernel(KH, KW, dh, dw, ph, pw, H, W):
    HW = H * W

    def kernel(x_ref, k_ref, o_ref):
        x = x_ref[...].astype(jnp.float32)                        # [Cg, HW]
        pos = jax.lax.broadcasted_iota(jnp.int32, (1, HW), 1)
        h_idx = pos // W
        w_idx = pos % W
        acc = None
        for kh in range(KH):
            for kw in range(KW):
                off_h = kh * dh - ph
                off_w = kw * dw - pw
                s = off_h * W + off_w
                # src[j] = x[j + s]  (circular; wrapped lanes are masked below)
                src = x if s == 0 else pltpu.roll(x, shift=(-s) % HW, axis=1)
                valid = ((h_idx >= -off_h) & (h_idx < H - off_h) &
                         (w_idx >= -off_w) & (w_idx < W - off_w))
                wgt = k_ref[pl.ds(kh * KW + kw, 1), :].astype(jnp.float32)  # [1, HW]
                wgt = jnp.where(valid, wgt, 0.0)
                tap = src * wgt
                acc = tap if acc is None else acc + tap
        o_ref[...] = acc.astype(o_ref.dtype)

    return kernel


def involution_aggregate_same(x_init, kern, G, KH, KW, dilation, padding):
    """Fast path: stride == (1,1) and output spatial == input spatial.

    x_init: [B, C, H, W]; kern: [B, G*K*K, H, W] -> [B, C, H, W].
    """
    B, C, H, W = x_init.shape
    Cg = C // G
    KK = KH * KW
    HW = H * W
    # TODO(synk): for very large Cg*H*W tiles (beyond VMEM) a halo-aware spatial
    # tiling of this kernel would be needed; typical involution configs fit.
    x_g = x_init.reshape(B, G, Cg, HW)
    k_g = kern.reshape(B, G, KK, HW)
    body = make_involution_roll_kernel(KH, KW, dilation[0], dilation[1],
                                       padding[0], padding[1], H, W)
    out = pl.pallas_call(
        body,
        out_shape=jax.ShapeDtypeStruct((B, G, Cg, HW), x_init.dtype),
        grid=(B, G),
        in_specs=[
            pl.BlockSpec((None, None, Cg, HW), lambda b, g: (b, g, 0, 0)),
            pl.BlockSpec((None, None, KK, HW), lambda b, g: (b, g, 0, 0)),
        ],
        out_specs=pl.BlockSpec((None, None, Cg, HW), lambda b, g: (b, g, 0, 0)),
        compiler_params=pltpu.CompilerParams(
            dimension_semantics=("parallel", "parallel"),
            vmem_limit_bytes=_VMEM_LIMIT),
    )(x_g, k_g)
    return out.reshape(B, C, H, W)


# ---------------------------------------------------------------------------
# Pallas kernel 3b (general fallback): strided/dilated aggregation over a padded
# input.  Slower (unaligned slices) but handles arbitrary stride/padding.
# ---------------------------------------------------------------------------
def make_involution_slice_kernel(KH, KW, dh, dw, sh, sw, H_out, W_out):
    def kernel(xp_ref, k_ref, o_ref):
        xp = xp_ref[...]                                          # [Cg, Hp, Wp]
        acc = None
        for kh in range(KH):
            for kw in range(KW):
                h0 = kh * dh
                w0 = kw * dw
                patch = xp[:, h0:h0 + sh * (H_out - 1) + 1:sh,
                              w0:w0 + sw * (W_out - 1) + 1:sw]    # [Cg, H_out, W_out]
                wgt = k_ref[kh * KW + kw]                         # [H_out, W_out]
                tap = patch.astype(jnp.float32) * wgt[None].astype(jnp.float32)
                acc = tap if acc is None else acc + tap
        o_ref[...] = acc.astype(o_ref.dtype)
    return kernel


def involution_aggregate_general(x_pad, kern, G, KH, KW, dilation, stride,
                                 H_out, W_out):
    """x_pad: [B, C, Hp, Wp] (zero-padded), kern: [B, G*K*K, H_out, W_out]."""
    B, C, Hp, Wp = x_pad.shape
    Cg = C // G
    KK = KH * KW
    kern = kern.reshape(B, G, KK, H_out, W_out)
    body = make_involution_slice_kernel(KH, KW, dilation[0], dilation[1],
                                        stride[0], stride[1], H_out, W_out)
    return pl.pallas_call(
        body,
        out_shape=jax.ShapeDtypeStruct((B, C, H_out, W_out), x_pad.dtype),
        grid=(B, G),
        in_specs=[
            pl.BlockSpec((None, Cg, Hp, Wp), lambda b, g: (b, g, 0, 0)),
            pl.BlockSpec((None, None, KK, H_out, W_out), lambda b, g: (b, g, 0, 0, 0)),
        ],
        out_specs=pl.BlockSpec((None, Cg, H_out, W_out), lambda b, g: (b, g, 0, 0)),
        compiler_params=pltpu.CompilerParams(
            dimension_semantics=("parallel", "parallel"),
            vmem_limit_bytes=_VMEM_LIMIT),
    )(x_pad, kern)


# ---------------------------------------------------------------------------
# Full Involution2d forward (glue in plain JAX, hot paths in Pallas).
# ---------------------------------------------------------------------------
def involution2d_forward(x, params, cfg):
    B, Cin, H, W = x.shape
    KH, KW = cfg["kernel_size"]
    sh, sw = cfg["stride"]
    dh, dw = cfg["dilation"]
    ph, pw = cfg["padding"]
    G = cfg["groups"]
    Cout = cfg["out_channels"]

    H_out = (H + 2 * ph - dh * (KH - 1) - 1) // sh + 1
    W_out = (W + 2 * pw - dw * (KW - 1) - 1) // sw + 1

    # initial_mapping: Identity if in_channels == out_channels, else 1x1 conv.
    x_init = x if Cin == Cout else pointwise_conv(x, params["w_init"])

    # kernel branch: o_mapping (AvgPool k=stride,s=stride) then fused
    # reduce -> BN(eval)+ReLU -> span in one pallas_call.
    if (sh, sw) == (1, 1):
        x_pool = x
    else:
        Hc, Wc = (H // sh) * sh, (W // sw) * sw
        x_pool = x[:, :, :Hc, :Wc].reshape(B, Cin, H // sh, sh, W // sw, sw).mean((3, 5))

    kern = kernel_branch(x_pool, params["w_reduce"], params["bn_scale"],
                         params["bn_shift"], params["w_span"])    # [B, K*K*G, kh, kw]
    assert kern.shape[-2:] == (H_out, W_out), \
        "kernel-branch spatial must match unfold output (same-style configs)"

    if (sh, sw) == (1, 1) and (H_out, W_out) == (H, W):
        # Fast path: lane-dense rolls + masks, no padded HBM copy.
        return involution_aggregate_same(x_init, kern, G, KH, KW, (dh, dw), (ph, pw))

    # General fallback (stride > 1 / non-same shapes): pad then strided windows.
    x_pad = jnp.pad(x_init, ((0, 0), (0, 0), (ph, ph), (pw, pw)))
    return involution_aggregate_general(x_pad, kern, G, KH, KW, (dh, dw),
                                        (sh, sw), H_out, W_out)


# ---------------------------------------------------------------------------
# Pure-JAX reference (no Pallas) used for correctness verification.
# ---------------------------------------------------------------------------
def involution2d_reference(x, params, cfg):
    B, Cin, H, W = x.shape
    KH, KW = cfg["kernel_size"]
    sh, sw = cfg["stride"]
    dh, dw = cfg["dilation"]
    ph, pw = cfg["padding"]
    G = cfg["groups"]
    Cout = cfg["out_channels"]

    H_out = (H + 2 * ph - dh * (KH - 1) - 1) // sh + 1
    W_out = (W + 2 * pw - dw * (KW - 1) - 1) // sw + 1

    x_init = x if Cin == Cout else jnp.einsum("oi,bihw->bohw", params["w_init"], x)
    x_pad = jnp.pad(x_init, ((0, 0), (0, 0), (ph, ph), (pw, pw)))

    patches = []
    for kh in range(KH):
        for kw in range(KW):
            patches.append(x_pad[:, :, kh * dh:kh * dh + sh * (H_out - 1) + 1:sh,
                                       kw * dw:kw * dw + sw * (W_out - 1) + 1:sw])
    unf = jnp.stack(patches, axis=2).reshape(B, G, Cout // G, KH * KW, H_out, W_out)

    if (sh, sw) == (1, 1):
        x_pool = x
    else:
        Hc, Wc = (H // sh) * sh, (W // sw) * sw
        x_pool = x[:, :, :Hc, :Wc].reshape(B, Cin, H // sh, sh, W // sw, sw).mean((3, 5))

    red = jnp.einsum("oi,bihw->bohw", params["w_reduce"], x_pool)
    red = jnp.maximum(red * params["bn_scale"][None, :, None, None]
                      + params["bn_shift"][None, :, None, None], 0.0)
    kern = jnp.einsum("oi,bihw->bohw", params["w_span"], red)
    kern = kern.reshape(B, G, KH * KW, H_out, W_out)

    out = (kern[:, :, None] * unf).sum(axis=3)
    return out.reshape(B, Cout, H_out, W_out)


if __name__ == "__main__":
    cfg = dict(in_channels=4, out_channels=8, kernel_size=(3, 3), stride=(1, 1),
               groups=2, reduce_ratio=2, dilation=(1, 1), padding=(1, 1), bias=False)
    Cin, Cout = cfg["in_channels"], cfg["out_channels"]
    G, rr = cfg["groups"], cfg["reduce_ratio"]
    KK = cfg["kernel_size"][0] * cfg["kernel_size"][1]
    Cred = Cout // rr

    key = jax.random.PRNGKey(0)
    k1, k2, k3, k4, k5, k6 = jax.random.split(key, 6)

    x = jax.random.normal(k1, (2, Cin, 16, 16), jnp.float32)

    # Deterministic parameter init (bias=False, so 1x1 convs are just weights).
    params = {
        "w_init":   (jax.random.normal(k2, (Cout, Cin), jnp.float32) * 0.1),
        "w_reduce": (jax.random.normal(k3, (Cred, Cin), jnp.float32) * 0.1),
        "w_span":   (jax.random.normal(k4, (KK * G, Cred), jnp.float32) * 0.1),
    }
    # Eval-mode BatchNorm (fresh running stats: mean=0, var=1), folded to scale/shift.
    # TODO(synk): training-mode BatchNorm (batch statistics) not implemented; eval-mode used.
    gamma = 1.0 + 0.1 * jax.random.normal(k5, (Cred,), jnp.float32)
    beta = 0.1 * jax.random.normal(k6, (Cred,), jnp.float32)
    run_mean = jnp.zeros((Cred,), jnp.float32)
    run_var = jnp.ones((Cred,), jnp.float32)
    eps = 1e-5
    bn_scale = gamma / jnp.sqrt(run_var + eps)
    bn_shift = beta - run_mean * bn_scale
    params["bn_scale"] = bn_scale
    params["bn_shift"] = bn_shift

    out = involution2d_forward(x, params, cfg)
    out = jax.block_until_ready(out)

    ref = involution2d_reference(x, params, cfg)
    assert out.shape == (2, Cout, 16, 16), out.shape
    assert jnp.allclose(out, ref, atol=2e-3, rtol=2e-3), \
        f"max abs err = {jnp.max(jnp.abs(out - ref))}"

    print("KERNEL_OK")
</pallas_src>

<mosaic_0001>
module attributes {stable_mosaic.version = 11 : i64} {
  func.func @_pw_conv_kernel(%arg0: i32, %arg1: i32, %arg2: memref<1x4x256xf32, #tpu.memory_space<vmem>>, %arg3: memref<8x4xf32, #tpu.memory_space<vmem>>, %arg4: memref<1x8x256xf32, #tpu.memory_space<vmem>>) attributes {dimension_semantics = [#tpu.dimension_semantics<parallel>, #tpu.dimension_semantics<parallel>], iteration_bounds = array<i64: 2, 1>, scalar_prefetch = 0 : i64, scratch_operands = 0 : i64, tpu.core_type = #tpu.core_type<tc>, window_params = [{transform_indices = @transform_0, window_bounds = array<i64: 1, 4, 256>}, {pipeline_mode = #tpu.pipeline_mode<synchronous>, transform_indices = @transform_1, window_bounds = array<i64: 8, 4>}, {transform_indices = @transform_2, window_bounds = array<i64: 1, 8, 256>}]} {
    %c0 = arith.constant 0 : index
    %c0_0 = arith.constant 0 : index
    %0 = vector.load %arg3[%c0, %c0_0] : memref<8x4xf32, #tpu.memory_space<vmem>>, vector<8x4xf32>
    %c0_1 = arith.constant 0 : index
    %c0_2 = arith.constant 0 : index
    %c0_3 = arith.constant 0 : index
    %1 = vector.load %arg2[%c0_1, %c0_2, %c0_3] : memref<1x4x256xf32, #tpu.memory_space<vmem>>, vector<1x4x256xf32>
    %2 = vector.shape_cast %1 : vector<1x4x256xf32> to vector<4x256xf32>
    %cst = arith.constant dense<0.000000e+00> : vector<8x256xf32>
    %3 = tpu.matmul %0, %2, %cst {dimension_numbers = #tpu.dot_dimension_numbers<[1], [0], [0], [1], [0, 0, 1, 1], [], []>} : vector<8x4xf32>, vector<4x256xf32>, vector<8x256xf32> -> vector<8x256xf32>
    %c0_4 = arith.constant 0 : index
    %c0_5 = arith.constant 0 : index
    %c0_6 = arith.constant 0 : index
    %4 = vector.load %arg4[%c0_4, %c0_5, %c0_6] : memref<1x8x256xf32, #tpu.memory_space<vmem>>, vector<1x8x256xf32>
    %5 = vector.shape_cast %4 : vector<1x8x256xf32> to vector<8x256xf32>
    %6 = vector.shape_cast %3 : vector<8x256xf32> to vector<1x8x256xf32>
    tpu.vector_store %arg4[%c0_4, %c0_5, %c0_6], %6 {strides = array<i32>} : memref<1x8x256xf32, #tpu.memory_space<vmem>>, vector<1x8x256xf32>,
    return
  }
  func.func @transform_0(%arg0: i32, %arg1: i32) -> (i32, i32, i32) {
    %c0_i32 = arith.constant 0 : i32
    %c0_i32_0 = arith.constant 0 : i32
    return %arg0, %c0_i32, %arg1 : i32, i32, i32
  }
  func.func @transform_1(%arg0: i32, %arg1: i32) -> (i32, i32) {
    %c0_i32 = arith.constant 0 : i32
    %c0_i32_0 = arith.constant 0 : i32
    %c0_i32_1 = arith.constant 0 : i32
    return %c0_i32, %c0_i32_0 : i32, i32
  }
  func.func @transform_2(%arg0: i32, %arg1: i32) -> (i32, i32, i32) {
    %c0_i32 = arith.constant 0 : i32
    %c0_i32_0 = arith.constant 0 : i32
    return %arg0, %c0_i32, %arg1 : i32, i32, i32
  }
}

</mosaic_0001>

<bundles_post_ra>
// kernel: tpu_custom_call.1
= control target key start
LH: loop header
LB: loop body
LE: loop exit
PB: predicated region body
PF: predicated region fallthrough
CT: control target
= control target key end

     0   :  { %7 = vsyncpa [#allocation3], 0  ;;  %s678_s0 = inlined_call_operand.hbm [shape: f32[2,4,256], index: 0, kind: input, shape index: {}]   ;;  %s679_s1 = inlined_call_operand.vmem [shape: f32[8,4], index: 1, kind: input, shape index: {}]   ;;  %s680_s2 = inlined_call_operand.hbm [shape: f32[2,8,256], index: 2, kind: output, shape index: {}]  }
   0x1   :  { %9 = vsyncpa [#allocation3 + $0x1], 0 }
   0x2   :  { %10 = vsyncpa [#allocation4], 0 }
   0x3   :  { %12 = vsyncpa [#allocation4 + $0x1], 0  ;;  %s554_s9 = smov 0   ;;  %s556_s10 = smov 0  }
   0x4   :  { %s558_s11 = smov 0   ;;  %s560_s12 = smov 0  }
   0x5   :  { %s562_s13 = smov 0   ;;  %s564_s14 = smov 0  }
   0x6 LB: > { %s342_s15 = sadd.s32 4294967295, %s537_s14   ;;  %s343_s16 = sadd.s32 4294967294, %s537_s14   ;;  %s537_s14 = sphi %s564_s14, %s18_s14   ;;  %s533_s13 = sphi %s562_s13, %s689_s13   ;;  %s529_s12 = sphi %s560_s12, %s688_s12   ;;  %s525_s11 = sphi %s558_s11, %s687_s11   ;;  %s521_s10 = sphi %s556_s10, %s686_s10   ;;  %s517_s9 = sphi %s554_s9, %s685_s9  }
   0x7   : > { %s30_s17 = sadd.s32 1, %s533_s13  ;;  %s39_s18 = sadd.s32 1, %s525_s11 }
   0x8   : > { %p32_p0 = scmp.ge.s32.totalorder %s30_s17, 2  ;;  %p46_p1 = scmp.ne.s32.totalorder %s525_s11, %s521_s10 }
   0x9   : > { %p47_p2 = scmp.eq.s32.totalorder %s537_s14, 0  ;;  %p52_p3 = scmp.ne.s32.totalorder %s521_s10, %s517_s9 }
   0xa   : > { %s691_s17 = smov (%p32_p0, %s30_s17), 0  ;;  %p53_p5 = scmp.eq.s32.totalorder %s342_s15, 0 }
   0xb   : > { %p595_p4 = por %p47_p2, %p46_p1  ;;  %s34_s20 = ssub.s32 %s533_s13, %s691_s17 }
   0xc   : > { %p99_p6 = scmp.eq.s32.totalorder %s342_s15, 1  ;;  %p37_p7 = scmp.eq.s32.totalorder %s34_s20, 0 }
   0xd   : > { %p601_p8 = por %p53_p5, %p52_p3  ;;  %p105_p10 = scmp.eq.s32.totalorder %s343_s16, 1 }
   0xe   : > { %p605_p9 = por %p99_p6, %p46_p1  ;;  %p345_p12 = scmp.ge.s32.totalorder %s537_s14, 2 }
   0xf   : > { %s610_s23 = scalar_select %p37_p7, %s525_s11, %s39_s18  }
  0x10   : > { %p612_p11 = por %p105_p10, %p52_p3  ;;  %p375_p13 = scmp.lt.s32.totalorder %s537_s14, 2 }
  0x11   : > { %s128_s25 = sand.u32 1, %s525_s11   ;;  %s361_s27 = sshll.u32 %s533_s13, 3 }
  0x12   : > { %s346_s26 = sshll.u32 %s128_s25, 3  ;;  %s139_s30 = scalar_lea.hbm %s678_s0, %s361_s27 }
  0x13   : > { %s132_s3 = scalar_lea.vmem [#allocation2], %s346_s26  ;;  %s141_s5 = sshll.u32 %s139_s30, 4  ;;  %s142_s5 = int_to_ptr.hbm [resolvable:$true] %s141_s5 }
  0x14   : > { %s143_s4 = sshll.u32 %s132_s3, 4  ;;  %p368_p0 = pnand %p375_p13, %p595_p4  ;;  %s144_s4 = int_to_ptr.vmem [resolvable:$true] %s143_s4 }
  0x15   : > { %p349_p1 = scmp.ge.s32.totalorder %s537_s14, 1  ;;  %p148_p2 = scmp.lt.s32.totalorder %s537_s14, 3 }
  0x16   : > { %s129_s6 = scalar_lea.sflag [#allocation3], %s128_s25 }
  0x17   : > { %370 = dma.hbm_to_vmem [thread:$0]  (!%p368_p0), %s142_s5, 128, %s144_s4, %s129_s6  }
  0x18   : > { %p149_p3 = pnand %p349_p1, %p148_p2 }
  0x19   : > { %s628_s7 = sand.u32 (!%p149_p3), 1, %s521_s10  }
  0x1a   : > { %152 = sbr.rel (%p149_p3) target bundleno = 172 (0xac), region = 28  ;;  %s350_s8 = sshll.u32 (!%p149_p3), %s628_s7, 3 }
  0x1b   : > { %s155_s15 = scalar_lea.sflag (!%p149_p3), [#allocation3], %s628_s7  ;;  %s158_s16 = scalar_lea.vmem (!%p149_p3), [#allocation2], %s350_s8 }
  0x1f   : > { %508 = dma.done.wait (%p601_p8), %s155_s15, 128  }
  0x20   : > { %510 = vsyncadd (%p601_p8), %s155_s15, 4294967168  ;;  %v183_v0 = vld [vmem:[%s158_s16] sm:$0xff]  ;;  %vm192_vm0 = vcmask 1043456   ;;  %v182_v1 = vld [vmem:[%s679_s1] sm:$0xff]  ;;  %vm188_vm1 = vcmask 31744   ;;  %s351_s20 = sshll.u32 %s628_s7, 4 }
  0x21   : > { %185 = vst [vmem:[#allocation1] ss:$2 sm:$0xff] %v183_v0  ;;  %s362_s21 = sshll.u32 %s529_s12, 4  ;;  %s179_s28 = scalar_lea.vmem [#allocation5], %s351_s20 }
  0x22   : > { %s253_s27 = scalar_lea.hbm %s680_s2, %s362_s21  ;;  %s255_s29 = sshll.u32 %s179_s28, 4  ;;  %s256_s29 = int_to_ptr.vmem [resolvable:$true] %s255_s29 }
  0x23   : > { %s257_s30 = sshll.u32 %s253_s27, 4  ;;  %s240_s3 = scalar_lea.sflag [#allocation4], %s628_s7  ;;  %s258_s30 = int_to_ptr.hbm [resolvable:$true] %s257_s30 }
  0x24   : > { %s469_s4 = sshra.s32 %s258_s30, 4  ;;  %s475_s8 = scalar_lea.hbm %s680_s2, 32  ;;  %s470_s4 = int_to_ptr.hbm [resolvable:$true] %s469_s4 }
  0x25   : > { %s471_s5 = scalar_lea.hbm %s470_s4, 16  ;;  %p476_p7 = scmp.lt.s32.totalorder %s470_s4, %s680_s2 }
  0x26   : > { %p472_p4 = scmp.ne.s32.totalorder %s470_s4, %s471_s5  ;;  %p477_p8 = scmp.lt.s32.totalorder %s475_s8, %s471_s5 }
  0x28   : > { %v186_v2 = vld.sshfl [vmem:[#allocation1] sm:$0xff pattern:$0x75316420]  ;;  %v187_v3 = vld.sshfl [vmem:[#allocation1 + $0x8] sm:$0xff pattern:$0x75316420]  ;;  %p473_p5 = pnand %p472_p4, %p605_p9  ;;  %p478_p10 = por %p477_p8, %p476_p7 }
  0x29   : > { %352 = vmatpush.msk.msra.mxu0 %vm192_vm0, %v186_v2  ;;  %354 = vmatpush.msk.msra.mxu1 %vm192_vm0, %v187_v3 }
  0x2a   : > { %353 = vmatmul.msk.f32.vlgmr.msra.gmra.mxu0 %vm188_vm1, %v182_v1  ;;  %355 = vmatmul.msk.f32.vlgmr.msra.gmra.mxu1 %vm188_vm1, %v182_v1  ;;  %p474_p6 = pneg %p473_p5 }
  0x2c   : > { %p479_p13 = pnand %p478_p10, %p474_p6 }
  0xa7   : > { %v214_v4 = vpop.f32.mrf.mxu0  ;;  %v234_v5 = vpop.f32.mrf.mxu1 }
  0xa8   : > { %237 = vst [vmem:[%s179_s28] sm:$0xff] %v214_v4 }
  0xa9   : > { %238 = vst [vmem:[%s179_s28 + $0x8] sm:$0xff] %v234_v5 }
  0xaa   : > { %482 = shalt.err (!%p479_p13)
}
  0xab   : > { %365 = dma.vmem_to_hbm [thread:$0]  (%p605_p9), %s256_s29, 256, %s258_s30, %s240_s3  }
  0xac PF: > { %s269_s7 = sand.u32 1, %s517_s9   ;;  %p372_p0 = pnand %p345_p12, %p612_p11 }
  0xad   : > { %s270_s18 = scalar_lea.sflag [#allocation4], %s269_s7 }
  0xae   : > { %p373_p1 = pneg %p372_p0 }
  0xb0   : > { %512 = dma.done.wait (%p373_p1), %s270_s18, 256  }
  0xb1   : > { %514 = vsyncadd (%p373_p1), %s270_s18, 4294967040  ;;  %s18_s14 = sadd.s32 1, %s537_s14   ;;  %s685_s9 = smov %s521_s10 }
  0xb2   : > { %p15_p2 = scmp.ge.s32.totalorder %s18_s14, 4   ;;  %s686_s10 = smov %s525_s11 }
  0xb3   : > { %s687_s11 = smov %s610_s23  ;;  %s688_s12 = smov %s533_s13 }
  0xb4   : > { %s689_s13 = smov %s691_s17  ;;  %17 = sbr.rel (!%p15_p2) target bundleno = 6 (0x6), region = 73 }
  0xb9   :  { %276 = vsyncpa [#allocation3], 1 }
  0xba   :  { %278 = vsyncpa [#allocation3 + $0x1], 1 }
  0xbb   :  { %279 = vsyncpa [#allocation4], 1 }
  0xbc   :  { %281 = vsyncpa [#allocation4 + $0x1], 1 }

</bundles_post_ra>
